<compile_context>
chip_gen: v6e
topology: v6e:2x2x1
jax: 0.10.0
libtpu: 0.0.40
codegen_flags: <defaults>
</compile_context>

<pallas_src>
import functools

import jax
import jax.numpy as jnp
from jax.experimental import pallas as pl
from jax.experimental.pallas import tpu as pltpu

IN_DIM = 8
OUT_DIM = 2
# Linear(8,32) Tanh Linear(32,128) Tanh Linear(128,100) Tanh Linear(100,60)
# Tanh Linear(60,30) Tanh Linear(30,16) Tanh Linear(16,4) Tanh Linear(4,2) Sigmoid
DIMS = [IN_DIM, 32, 128, 100, 60, 30, 16, 4, OUT_DIM]
N_LAYERS = len(DIMS) - 1            # 8
N_CORR = OUT_DIM * OUT_DIM          # 4
OUT_COLS = N_CORR + 2 * OUT_DIM     # 4 + 2 + 2 = 8 real output columns
W_PAD = 256                         # storage width of the packed weight stack

# Padded activation widths a_0..a_8 (a_0 is the raw [x | y] concat, width 16).
# Group A (model_a) lives in lanes [0, B_OFF[k]); group B (model_b) in lanes
# [B_OFF[k], ACT_W[k]).  Thin layers use 128-lane activations, fat ones 256.
ACT_W = [2 * IN_DIM, 128, 256, 256, 128, 128, 128, 128, 128]
B_OFF = [IN_DIM,      64, 128, 128,  64,  64,  64,  64,  64]

for _k in range(N_LAYERS + 1):
    assert DIMS[_k] <= B_OFF[_k] and B_OFF[_k] + DIMS[_k] <= ACT_W[_k] <= W_PAD


def _round_up(x, m):
    return ((x + m - 1) // m) * m


# ----------------------------------------------------------------------------
# Kernel
# ----------------------------------------------------------------------------
def _sim_corr_kernel(x_ref, y_ref, w_ref, b_ref, out_ref):
    """Fused dual-MLP forward for one batch tile.

    x_ref, y_ref : (TB, 8)  f32 raw inputs (no padding)
    w_ref        : (N_LAYERS, 256, 256) bf16 block-diagonal packed weights
    b_ref        : (N_LAYERS, 1, 256)   f32 packed biases
    out_ref      : (TB, 8)  f32; cols 0:4 outer product, 4:6 x_emb, 6:8 y_emb
    """
    # Layer-0 input is simply [x | y] along lanes; W0 rows 0:8 map to group A's
    # output columns and rows 8:16 to group B's, so no zero-padded input slab
    # is ever built.
    h = jnp.concatenate([x_ref[...], y_ref[...]], axis=-1).astype(jnp.bfloat16)

    for i in range(N_LAYERS):
        wi, wo = ACT_W[i], ACT_W[i + 1]
        # bf16 MXU matmul, f32 accumulation; static ref slices are tile-aligned
        # (row counts multiples of 16, col counts multiples of 128).
        z = jnp.dot(h, w_ref[i, :wi, :wo],
                    preferred_element_type=jnp.float32)
        z = z + b_ref[i, :, :wo]
        if i < N_LAYERS - 1:
            h = jnp.tanh(z).astype(jnp.bfloat16)          # EUP in f32
        else:
            h = jax.nn.sigmoid(z)                         # keep final in f32

    xa = h[:, 0:OUT_DIM]                                  # model_a output
    yb = h[:, B_OFF[-1]:B_OFF[-1] + OUT_DIM]              # model_b output

    # out[:, i*OUT_DIM + j] = xa[:, i] * yb[:, j]  (matches einsum + reshape)
    out_ref[:, 0:OUT_DIM] = xa[:, 0:1] * yb
    out_ref[:, OUT_DIM:2 * OUT_DIM] = xa[:, 1:2] * yb
    out_ref[:, 2 * OUT_DIM:3 * OUT_DIM] = xa
    out_ref[:, 3 * OUT_DIM:4 * OUT_DIM] = yb


# ----------------------------------------------------------------------------
# Host-side parameter packing (done once at init time)
# ----------------------------------------------------------------------------
def pack_params(params_a, params_b):
    """Pack both MLPs into one block-diagonal, zero-padded bf16 weight stack
    and an f32 bias stack (2 parameter DMAs total)."""
    w_stack = jnp.zeros((N_LAYERS, W_PAD, W_PAD), jnp.float32)
    b_stack = jnp.zeros((N_LAYERS, 1, W_PAD), jnp.float32)
    for g, (ws, bs) in enumerate((params_a, params_b)):
        for i in range(N_LAYERS):
            fi, fo = DIMS[i], DIMS[i + 1]
            ri = 0 if g == 0 else B_OFF[i]        # row (input-lane) offset
            ci = 0 if g == 0 else B_OFF[i + 1]    # col (output-lane) offset
            w_stack = w_stack.at[i, ri:ri + fi, ci:ci + fo].set(ws[i])
            b_stack = b_stack.at[i, 0, ci:ci + fo].set(bs[i].reshape(-1))
    return w_stack.astype(jnp.bfloat16), b_stack


# ----------------------------------------------------------------------------
# Forward wrapper
# ----------------------------------------------------------------------------
def _pick_tile(batch, block_b):
    """Balanced batch tile: sublane multiple of 8; even tile count when more
    than one tile is needed (v7x has 2 TensorCores) and no ~2x Bp padding."""
    n = -(-batch // block_b)
    if n > 1 and n % 2:
        n += 1
    return _round_up(-(-batch // n), 8)


@functools.partial(jax.jit, static_argnames=("block_b",))
def baseline_sim_corr(x, y, w_stack, b_stack, *, block_b=512):
    """x, y: (B, IN_DIM). Returns (out (B,4), x_emb (B,2), y_emb (B,2)), f32."""
    B = x.shape[0]
    TB = _pick_tile(B, block_b)
    grid = -(-B // TB)
    Bp = grid * TB

    x_in = x.astype(jnp.float32)
    y_in = y.astype(jnp.float32)
    if Bp != B:                                   # cheap (B,8) batch pad only
        pad = ((0, Bp - B), (0, 0))
        x_in = jnp.pad(x_in, pad)
        y_in = jnp.pad(y_in, pad)

    out_full = pl.pallas_call(
        _sim_corr_kernel,
        out_shape=jax.ShapeDtypeStruct((Bp, OUT_COLS), jnp.float32),
        grid_spec=pltpu.PrefetchScalarGridSpec(
            num_scalar_prefetch=0,
            grid=(grid,),
            in_specs=[
                pl.BlockSpec((TB, IN_DIM), lambda i: (i, 0)),
                pl.BlockSpec((TB, IN_DIM), lambda i: (i, 0)),
                pl.BlockSpec((N_LAYERS, W_PAD, W_PAD), lambda i: (0, 0, 0)),
                pl.BlockSpec((N_LAYERS, 1, W_PAD), lambda i: (0, 0, 0)),
            ],
            out_specs=pl.BlockSpec((TB, OUT_COLS), lambda i: (i, 0)),
        ),
        compiler_params=pltpu.CompilerParams(
            dimension_semantics=("parallel",)),
    )(x_in, y_in, w_stack, b_stack)

    out = out_full[:B, :N_CORR]
    x_emb = out_full[:B, N_CORR:N_CORR + OUT_DIM]
    y_emb = out_full[:B, N_CORR + OUT_DIM:N_CORR + 2 * OUT_DIM]
    return out, x_emb, y_emb


# ----------------------------------------------------------------------------
# Init + pure-JAX reference
# ----------------------------------------------------------------------------
def init_mlp_params(key):
    """PyTorch-style init: U(-1/sqrt(fan_in), 1/sqrt(fan_in)); W is (in, out)."""
    ws, bs = [], []
    for i in range(N_LAYERS):
        fan_in, fan_out = DIMS[i], DIMS[i + 1]
        key, kw, kb = jax.random.split(key, 3)
        bound = 1.0 / (fan_in ** 0.5)
        ws.append(jax.random.uniform(kw, (fan_in, fan_out), jnp.float32,
                                     minval=-bound, maxval=bound))
        bs.append(jax.random.uniform(kb, (1, fan_out), jnp.float32,
                                     minval=-bound, maxval=bound))
    return ws, bs


def reference_forward(x, y, params_a, params_b):
    """Pure-JAX f32 reference mirroring the PyTorch module."""
    def mlp(h, ws, bs):
        for i in range(N_LAYERS):
            h = h @ ws[i] + bs[i]
            h = jnp.tanh(h) if i < N_LAYERS - 1 else jax.nn.sigmoid(h)
        return h
    xa = mlp(x, *params_a)
    yb = mlp(y, *params_b)
    out = jnp.einsum('bi,bj->bij', xa, yb).reshape(x.shape[0], -1)
    return out, xa, yb


if __name__ == "__main__":
    key = jax.random.PRNGKey(0)
    k_x, k_y, k_a, k_b = jax.random.split(key, 4)

    B = 8
    x = jax.random.normal(k_x, (B, IN_DIM), jnp.float32)
    y = jax.random.normal(k_y, (B, IN_DIM), jnp.float32)

    params_a = init_mlp_params(k_a)
    params_b = init_mlp_params(k_b)
    w_stack, b_stack = pack_params(params_a, params_b)   # one-time packing

    out, x_emb, y_emb = baseline_sim_corr(x, y, w_stack, b_stack)
    jax.block_until_ready((out, x_emb, y_emb))

    ref_out, ref_x, ref_y = reference_forward(x, y, params_a, params_b)
    # bf16 MXU path (f32 accumulation): relaxed tolerance vs the f32 reference.
    assert jnp.allclose(out, ref_out, atol=3e-2, rtol=3e-2), \
        float(jnp.max(jnp.abs(out - ref_out)))
    assert jnp.allclose(x_emb, ref_x, atol=3e-2, rtol=3e-2), \
        float(jnp.max(jnp.abs(x_emb - ref_x)))
    assert jnp.allclose(y_emb, ref_y, atol=3e-2, rtol=3e-2), \
        float(jnp.max(jnp.abs(y_emb - ref_y)))

    print("KERNEL_OK")
</pallas_src>

<mosaic_0001>
module attributes {stable_mosaic.version = 11 : i64} {
  func.func @_sim_corr_kernel(%arg0: i32, %arg1: memref<8x8xf32, #tpu.memory_space<vmem>>, %arg2: memref<8x8xf32, #tpu.memory_space<vmem>>, %arg3: memref<8x256x256xbf16, #tpu.memory_space<vmem>>, %arg4: memref<8x1x256xf32, #tpu.memory_space<vmem>>, %arg5: memref<8x8xf32, #tpu.memory_space<vmem>>) attributes {dimension_semantics = [#tpu.dimension_semantics<parallel>], iteration_bounds = array<i64: 1>, scalar_prefetch = 0 : i64, scratch_operands = 0 : i64, tpu.core_type = #tpu.core_type<tc>, window_params = [{transform_indices = @transform_0, window_bounds = array<i64: 8, 8>}, {transform_indices = @transform_1, window_bounds = array<i64: 8, 8>}, {pipeline_mode = #tpu.pipeline_mode<synchronous>, transform_indices = @transform_2, window_bounds = array<i64: 8, 256, 256>}, {pipeline_mode = #tpu.pipeline_mode<synchronous>, transform_indices = @transform_3, window_bounds = array<i64: 8, 1, 256>}, {transform_indices = @transform_4, window_bounds = array<i64: 8, 8>}]} {
    %c0 = arith.constant 0 : index
    %c0_0 = arith.constant 0 : index
    %0 = vector.load %arg1[%c0, %c0_0] : memref<8x8xf32, #tpu.memory_space<vmem>>, vector<8x8xf32>
    %c0_1 = arith.constant 0 : index
    %c0_2 = arith.constant 0 : index
    %1 = vector.load %arg2[%c0_1, %c0_2] : memref<8x8xf32, #tpu.memory_space<vmem>>, vector<8x8xf32>
    %2 = tpu.concatenate %0, %1 in 1 : vector<8x8xf32>, vector<8x8xf32> -> vector<8x16xf32>
    %3 = arith.truncf %2 : vector<8x16xf32> to vector<8x16xbf16>
    %c0_3 = arith.constant 0 : index
    %c0_4 = arith.constant 0 : index
    %c0_5 = arith.constant 0 : index
    %4 = vector.load %arg3[%c0_3, %c0_4, %c0_5] : memref<8x256x256xbf16, #tpu.memory_space<vmem>>, vector<1x16x128xbf16>
    %5 = vector.shape_cast %4 : vector<1x16x128xbf16> to vector<16x128xbf16>
    %cst = arith.constant dense<0.000000e+00> : vector<8x128xf32>
    %6 = tpu.matmul %3, %5, %cst {dimension_numbers = #tpu.dot_dimension_numbers<[1], [0], [0], [1], [0, 0, 1, 1], [], []>} : vector<8x16xbf16>, vector<16x128xbf16>, vector<8x128xf32> -> vector<8x128xf32>
    %c0_6 = arith.constant 0 : index
    %c0_7 = arith.constant 0 : index
    %c0_8 = arith.constant 0 : index
    %7 = vector.load %arg4[%c0_6, %c0_7, %c0_8] : memref<8x1x256xf32, #tpu.memory_space<vmem>>, vector<1x1x128xf32>
    %8 = vector.shape_cast %7 : vector<1x1x128xf32> to vector<1x128xf32>
    %9 = vector.broadcast %8 : vector<1x128xf32> to vector<8x128xf32>
    %10 = arith.addf %6, %9 : vector<8x128xf32>
    %11 = math.tanh %10 : vector<8x128xf32>
    %12 = arith.truncf %11 : vector<8x128xf32> to vector<8x128xbf16>
    %c1 = arith.constant 1 : index
    %c0_9 = arith.constant 0 : index
    %c0_10 = arith.constant 0 : index
    %13 = vector.load %arg3[%c1, %c0_9, %c0_10] : memref<8x256x256xbf16, #tpu.memory_space<vmem>>, vector<1x128x256xbf16>
    %14 = vector.shape_cast %13 : vector<1x128x256xbf16> to vector<128x256xbf16>
    %cst_11 = arith.constant dense<0.000000e+00> : vector<8x256xf32>
    %15 = tpu.matmul %12, %14, %cst_11 {dimension_numbers = #tpu.dot_dimension_numbers<[1], [0], [0], [1], [0, 0, 1, 1], [], []>} : vector<8x128xbf16>, vector<128x256xbf16>, vector<8x256xf32> -> vector<8x256xf32>
    %c1_12 = arith.constant 1 : index
    %c0_13 = arith.constant 0 : index
    %c0_14 = arith.constant 0 : index
    %16 = vector.load %arg4[%c1_12, %c0_13, %c0_14] : memref<8x1x256xf32, #tpu.memory_space<vmem>>, vector<1x1x256xf32>
    %17 = vector.shape_cast %16 : vector<1x1x256xf32> to vector<1x256xf32>
    %18 = vector.broadcast %17 : vector<1x256xf32> to vector<8x256xf32>
    %19 = arith.addf %15, %18 : vector<8x256xf32>
    %20 = math.tanh %19 : vector<8x256xf32>
    %21 = arith.truncf %20 : vector<8x256xf32> to vector<8x256xbf16>
    %c2 = arith.constant 2 : index
    %c0_15 = arith.constant 0 : index
    %c0_16 = arith.constant 0 : index
    %22 = vector.load %arg3[%c2, %c0_15, %c0_16] : memref<8x256x256xbf16, #tpu.memory_space<vmem>>, vector<1x256x256xbf16>
    %23 = vector.shape_cast %22 : vector<1x256x256xbf16> to vector<256x256xbf16>
    %cst_17 = arith.constant dense<0.000000e+00> : vector<8x256xf32>
    %24 = tpu.matmul %21, %23, %cst_17 {dimension_numbers = #tpu.dot_dimension_numbers<[1], [0], [0], [1], [0, 0, 1, 1], [], []>} : vector<8x256xbf16>, vector<256x256xbf16>, vector<8x256xf32> -> vector<8x256xf32>
    %c2_18 = arith.constant 2 : index
    %c0_19 = arith.constant 0 : index
    %c0_20 = arith.constant 0 : index
    %25 = vector.load %arg4[%c2_18, %c0_19, %c0_20] : memref<8x1x256xf32, #tpu.memory_space<vmem>>, vector<1x1x256xf32>
    %26 = vector.shape_cast %25 : vector<1x1x256xf32> to vector<1x256xf32>
    %27 = vector.broadcast %26 : vector<1x256xf32> to vector<8x256xf32>
    %28 = arith.addf %24, %27 : vector<8x256xf32>
    %29 = math.tanh %28 : vector<8x256xf32>
    %30 = arith.truncf %29 : vector<8x256xf32> to vector<8x256xbf16>
    %c3 = arith.constant 3 : index
    %c0_21 = arith.constant 0 : index
    %c0_22 = arith.constant 0 : index
    %31 = vector.load %arg3[%c3, %c0_21, %c0_22] : memref<8x256x256xbf16, #tpu.memory_space<vmem>>, vector<1x256x128xbf16>
    %32 = vector.shape_cast %31 : vector<1x256x128xbf16> to vector<256x128xbf16>
    %cst_23 = arith.constant dense<0.000000e+00> : vector<8x128xf32>
    %33 = tpu.matmul %30, %32, %cst_23 {dimension_numbers = #tpu.dot_dimension_numbers<[1], [0], [0], [1], [0, 0, 1, 1], [], []>} : vector<8x256xbf16>, vector<256x128xbf16>, vector<8x128xf32> -> vector<8x128xf32>
    %c3_24 = arith.constant 3 : index
    %c0_25 = arith.constant 0 : index
    %c0_26 = arith.constant 0 : index
    %34 = vector.load %arg4[%c3_24, %c0_25, %c0_26] : memref<8x1x256xf32, #tpu.memory_space<vmem>>, vector<1x1x128xf32>
    %35 = vector.shape_cast %34 : vector<1x1x128xf32> to vector<1x128xf32>
    %36 = vector.broadcast %35 : vector<1x128xf32> to vector<8x128xf32>
    %37 = arith.addf %33, %36 : vector<8x128xf32>
    %38 = math.tanh %37 : vector<8x128xf32>
    %39 = arith.truncf %38 : vector<8x128xf32> to vector<8x128xbf16>
    %c4 = arith.constant 4 : index
    %c0_27 = arith.constant 0 : index
    %c0_28 = arith.constant 0 : index
    %40 = vector.load %arg3[%c4, %c0_27, %c0_28] : memref<8x256x256xbf16, #tpu.memory_space<vmem>>, vector<1x128x128xbf16>
    %41 = vector.shape_cast %40 : vector<1x128x128xbf16> to vector<128x128xbf16>
    %cst_29 = arith.constant dense<0.000000e+00> : vector<8x128xf32>
    %42 = tpu.matmul %39, %41, %cst_29 {dimension_numbers = #tpu.dot_dimension_numbers<[1], [0], [0], [1], [0, 0, 1, 1], [], []>} : vector<8x128xbf16>, vector<128x128xbf16>, vector<8x128xf32> -> vector<8x128xf32>
    %c4_30 = arith.constant 4 : index
    %c0_31 = arith.constant 0 : index
    %c0_32 = arith.constant 0 : index
    %43 = vector.load %arg4[%c4_30, %c0_31, %c0_32] : memref<8x1x256xf32, #tpu.memory_space<vmem>>, vector<1x1x128xf32>
    %44 = vector.shape_cast %43 : vector<1x1x128xf32> to vector<1x128xf32>
    %45 = vector.broadcast %44 : vector<1x128xf32> to vector<8x128xf32>
    %46 = arith.addf %42, %45 : vector<8x128xf32>
    %47 = math.tanh %46 : vector<8x128xf32>
    %48 = arith.truncf %47 : vector<8x128xf32> to vector<8x128xbf16>
    %c5 = arith.constant 5 : index
    %c0_33 = arith.constant 0 : index
    %c0_34 = arith.constant 0 : index
    %49 = vector.load %arg3[%c5, %c0_33, %c0_34] : memref<8x256x256xbf16, #tpu.memory_space<vmem>>, vector<1x128x128xbf16>
    %50 = vector.shape_cast %49 : vector<1x128x128xbf16> to vector<128x128xbf16>
    %cst_35 = arith.constant dense<0.000000e+00> : vector<8x128xf32>
    %51 = tpu.matmul %48, %50, %cst_35 {dimension_numbers = #tpu.dot_dimension_numbers<[1], [0], [0], [1], [0, 0, 1, 1], [], []>} : vector<8x128xbf16>, vector<128x128xbf16>, vector<8x128xf32> -> vector<8x128xf32>
    %c5_36 = arith.constant 5 : index
    %c0_37 = arith.constant 0 : index
    %c0_38 = arith.constant 0 : index
    %52 = vector.load %arg4[%c5_36, %c0_37, %c0_38] : memref<8x1x256xf32, #tpu.memory_space<vmem>>, vector<1x1x128xf32>
    %53 = vector.shape_cast %52 : vector<1x1x128xf32> to vector<1x128xf32>
    %54 = vector.broadcast %53 : vector<1x128xf32> to vector<8x128xf32>
    %55 = arith.addf %51, %54 : vector<8x128xf32>
    %56 = math.tanh %55 : vector<8x128xf32>
    %57 = arith.truncf %56 : vector<8x128xf32> to vector<8x128xbf16>
    %c6 = arith.constant 6 : index
    %c0_39 = arith.constant 0 : index
    %c0_40 = arith.constant 0 : index
    %58 = vector.load %arg3[%c6, %c0_39, %c0_40] : memref<8x256x256xbf16, #tpu.memory_space<vmem>>, vector<1x128x128xbf16>
    %59 = vector.shape_cast %58 : vector<1x128x128xbf16> to vector<128x128xbf16>
    %cst_41 = arith.constant dense<0.000000e+00> : vector<8x128xf32>
    %60 = tpu.matmul %57, %59, %cst_41 {dimension_numbers = #tpu.dot_dimension_numbers<[1], [0], [0], [1], [0, 0, 1, 1], [], []>} : vector<8x128xbf16>, vector<128x128xbf16>, vector<8x128xf32> -> vector<8x128xf32>
    %c6_42 = arith.constant 6 : index
    %c0_43 = arith.constant 0 : index
    %c0_44 = arith.constant 0 : index
    %61 = vector.load %arg4[%c6_42, %c0_43, %c0_44] : memref<8x1x256xf32, #tpu.memory_space<vmem>>, vector<1x1x128xf32>
    %62 = vector.shape_cast %61 : vector<1x1x128xf32> to vector<1x128xf32>
    %63 = vector.broadcast %62 : vector<1x128xf32> to vector<8x128xf32>
    %64 = arith.addf %60, %63 : vector<8x128xf32>
    %65 = math.tanh %64 : vector<8x128xf32>
    %66 = arith.truncf %65 : vector<8x128xf32> to vector<8x128xbf16>
    %c7 = arith.constant 7 : index
    %c0_45 = arith.constant 0 : index
    %c0_46 = arith.constant 0 : index
    %67 = vector.load %arg3[%c7, %c0_45, %c0_46] : memref<8x256x256xbf16, #tpu.memory_space<vmem>>, vector<1x128x128xbf16>
    %68 = vector.shape_cast %67 : vector<1x128x128xbf16> to vector<128x128xbf16>
    %cst_47 = arith.constant dense<0.000000e+00> : vector<8x128xf32>
    %69 = tpu.matmul %66, %68, %cst_47 {dimension_numbers = #tpu.dot_dimension_numbers<[1], [0], [0], [1], [0, 0, 1, 1], [], []>} : vector<8x128xbf16>, vector<128x128xbf16>, vector<8x128xf32> -> vector<8x128xf32>
    %c7_48 = arith.constant 7 : index
    %c0_49 = arith.constant 0 : index
    %c0_50 = arith.constant 0 : index
    %70 = vector.load %arg4[%c7_48, %c0_49, %c0_50] : memref<8x1x256xf32, #tpu.memory_space<vmem>>, vector<1x1x128xf32>
    %71 = vector.shape_cast %70 : vector<1x1x128xf32> to vector<1x128xf32>
    %72 = vector.broadcast %71 : vector<1x128xf32> to vector<8x128xf32>
    %73 = arith.addf %69, %72 : vector<8x128xf32>
    %74 = arith.negf %73 : vector<8x128xf32>
    %75 = math.exp %74 : vector<8x128xf32>
    %cst_51 = arith.constant 1.000000e+00 : f32
    %76 = vector.broadcast %cst_51 : f32 to vector<8x128xf32>
    %77 = arith.addf %76, %75 : vector<8x128xf32>
    %78 = arith.divf %76, %77 : vector<8x128xf32>
    %79 = vector.extract_strided_slice %78 {offsets = [0, 0], sizes = [8, 2], strides = [1, 1]} : vector<8x128xf32> to vector<8x2xf32>
    %80 = vector.extract_strided_slice %78 {offsets = [0, 64], sizes = [8, 2], strides = [1, 1]} : vector<8x128xf32> to vector<8x2xf32>
    %81 = vector.extract_strided_slice %79 {offsets = [0, 0], sizes = [8, 1], strides = [1, 1]} : vector<8x2xf32> to vector<8x1xf32>
    %82 = vector.broadcast %81 : vector<8x1xf32> to vector<8x2xf32>
    %83 = arith.mulf %82, %80 : vector<8x2xf32>
    %c0_52 = arith.constant 0 : index
    %c0_53 = arith.constant 0 : index
    %84 = vector.load %arg5[%c0_52, %c0_53] : memref<8x8xf32, #tpu.memory_space<vmem>>, vector<8x2xf32>
    tpu.vector_store %arg5[%c0_52, %c0_53], %83 {strides = array<i32>} : memref<8x8xf32, #tpu.memory_space<vmem>>, vector<8x2xf32>,
    %85 = vector.extract_strided_slice %79 {offsets = [0, 1], sizes = [8, 1], strides = [1, 1]} : vector<8x2xf32> to vector<8x1xf32>
    %86 = vector.broadcast %85 : vector<8x1xf32> to vector<8x2xf32>
    %87 = arith.mulf %86, %80 : vector<8x2xf32>
    %c0_54 = arith.constant 0 : index
    %c2_55 = arith.constant 2 : index
    %88 = vector.load %arg5[%c0_54, %c2_55] : memref<8x8xf32, #tpu.memory_space<vmem>>, vector<8x2xf32>
    tpu.vector_store %arg5[%c0_54, %c2_55], %87 {strides = array<i32>} : memref<8x8xf32, #tpu.memory_space<vmem>>, vector<8x2xf32>,
    %c0_56 = arith.constant 0 : index
    %c4_57 = arith.constant 4 : index
    %89 = vector.load %arg5[%c0_56, %c4_57] : memref<8x8xf32, #tpu.memory_space<vmem>>, vector<8x2xf32>
    tpu.vector_store %arg5[%c0_56, %c4_57], %79 {strides = array<i32>} : memref<8x8xf32, #tpu.memory_space<vmem>>, vector<8x2xf32>,
    %c0_58 = arith.constant 0 : index
    %c6_59 = arith.constant 6 : index
    %90 = vector.load %arg5[%c0_58, %c6_59] : memref<8x8xf32, #tpu.memory_space<vmem>>, vector<8x2xf32>
    tpu.vector_store %arg5[%c0_58, %c6_59], %80 {strides = array<i32>} : memref<8x8xf32, #tpu.memory_space<vmem>>, vector<8x2xf32>,
    return
  }
  func.func @transform_0(%arg0: i32) -> (i32, i32) {
    %c0_i32 = arith.constant 0 : i32
    %c0_i32_0 = arith.constant 0 : i32
    return %arg0, %c0_i32 : i32, i32
  }
  func.func @transform_1(%arg0: i32) -> (i32, i32) {
    %c0_i32 = arith.constant 0 : i32
    %c0_i32_0 = arith.constant 0 : i32
    return %arg0, %c0_i32 : i32, i32
  }
  func.func @transform_2(%arg0: i32) -> (i32, i32, i32) {
    %c0_i32 = arith.constant 0 : i32
    %c0_i32_0 = arith.constant 0 : i32
    %c0_i32_1 = arith.constant 0 : i32
    %c0_i32_2 = arith.constant 0 : i32
    return %c0_i32, %c0_i32_0, %c0_i32_1 : i32, i32, i32
  }
  func.func @transform_3(%arg0: i32) -> (i32, i32, i32) {
    %c0_i32 = arith.constant 0 : i32
    %c0_i32_0 = arith.constant 0 : i32
    %c0_i32_1 = arith.constant 0 : i32
    %c0_i32_2 = arith.constant 0 : i32
    return %c0_i32, %c0_i32_0, %c0_i32_1 : i32, i32, i32
  }
  func.func @transform_4(%arg0: i32) -> (i32, i32) {
    %c0_i32 = arith.constant 0 : i32
    %c0_i32_0 = arith.constant 0 : i32
    return %arg0, %c0_i32 : i32, i32
  }
}

</mosaic_0001>

<bundles_post_ra>
// kernel: baseline_sim_corr.1
= control target key start
LH: loop header
LB: loop body
LE: loop exit
PB: predicated region body
PF: predicated region fallthrough
CT: control target
= control target key end

     0   :  { %9 = vsyncpa [#allocation3], 0  ;;  %s1835_s0 = inlined_call_operand.hbm [shape: f32[8,8], index: 0, kind: input, shape index: {}]   ;;  %s1836_s1 = inlined_call_operand.hbm [shape: f32[8,8], index: 1, kind: input, shape index: {}]   ;;  %s1837_s2 = inlined_call_operand.hbm [shape: bf16[8,256,256], index: 2, kind: input, shape index: {}]   ;;  %s1838_s3 = inlined_call_operand.hbm [shape: f32[8,1,256], index: 3, kind: input, shape index: {}]   ;;  %s1839_s4 = inlined_call_operand.vmem [shape: f32[8,8], index: 4, kind: output, shape index: {}]  }
   0x1   :  { %10 = vsyncpa [#allocation5], 0 }
   0x2   :  { %11 = vsyncpa [#allocation8], 0  ;;  %s1727_s15 = smov [#allocation4]   ;;  %s1728_s17 = smov [#allocation2]  }
   0x3   :  { %s28_s16 = sshll.u32 %s1727_s15, 4  ;;  %s18_s18 = sshll.u32 %s1728_s17, 4  ;;  %s29_s16 = int_to_ptr.vmem [resolvable:$true] %s28_s16  ;;  %s19_s18 = int_to_ptr.vmem [resolvable:$true] %s18_s18 }
   0x4   :  { %s1649_s19 = scalar_lea.vmem %s29_s16, 128  ;;  %p1654_p1 = scmp.lt.s32.totalorder %s29_s16, %s29_s16 }
   0x5   :  { %p1650_p0 = scmp.ne.s32.totalorder %s29_s16, %s1649_s19  ;;  %p1655_p2 = scmp.lt.s32.totalorder %s1649_s19, %s1649_s19 }
   0x7   :  { %p1656_p3 = por %p1655_p2, %p1654_p1 }
   0x9   :  { %p1657_p4 = pnand %p1656_p3, %p1650_p0 }
   0xb   :  { %1660 = shalt.err (!%p1657_p4)
}
   0xc   :  { %31 = dma.hbm_to_vmem [thread:$0]  %s1836_s1, 128, %s29_s16, [#allocation5]  }
   0xd   :  { %s1669_s22 = scalar_lea.vmem %s19_s18, 128  ;;  %p1674_p6 = scmp.lt.s32.totalorder %s19_s18, %s19_s18 }
   0xe   :  { %p1670_p5 = scmp.ne.s32.totalorder %s19_s18, %s1669_s22  ;;  %p1675_p7 = scmp.lt.s32.totalorder %s1669_s22, %s1669_s22 }
  0x10   :  { %p1676_p8 = por %p1675_p7, %p1674_p6 }
  0x12   :  { %p1677_p9 = pnand %p1676_p8, %p1670_p5 }
  0x14   :  { %1680 = shalt.err (!%p1677_p9)
}
  0x15   :  { %21 = dma.hbm_to_vmem [thread:$0]  %s1835_s0, 128, %s19_s18, [#allocation3]  }
  0x16   :  { %s1729_s25 = smov [#allocation6]  }
  0x17   :  { %s37_s26 = sshll.u32 %s1729_s25, 4  ;;  %s38_s26 = int_to_ptr.vmem [resolvable:$true] %s37_s26 }
  0x18   :  { %s1689_s27 = scalar_lea.vmem %s38_s26, 32768  ;;  %p1694_p11 = scmp.lt.s32.totalorder %s38_s26, %s38_s26 }
  0x19   :  { %p1690_p10 = scmp.ne.s32.totalorder %s38_s26, %s1689_s27  ;;  %p1695_p12 = scmp.lt.s32.totalorder %s1689_s27, %s1689_s27 }
  0x1b   :  { %p1696_p13 = por %p1695_p12, %p1694_p11 }
  0x1d   :  { %p1697_p0 = pnand %p1696_p13, %p1690_p10 }
  0x1f   :  { %1700 = shalt.err (!%p1697_p0)
}
  0x20   :  { %s1730_s1 = smov 128   ;;  %s1731_s28 = smov 8  }
  0x21   :  { %43 = dma.hbm_to_vmem [thread:$0]  %s1837_s2, 32768, %s38_s26, [#allocation5], %s1730_s1, %s1730_s1, %s1731_s28  }
  0x22   :  { %s1732_s5 = smov [#allocation7]  }
  0x23   :  { %s49_s6 = sshll.u32 %s1732_s5, 4  ;;  %s50_s6 = int_to_ptr.vmem [resolvable:$true] %s49_s6 }
  0x24   :  { %s1709_s0 = scalar_lea.vmem %s50_s6, 256  ;;  %p1714_p2 = scmp.lt.s32.totalorder %s50_s6, %s50_s6 }
  0x25   :  { %p1710_p1 = scmp.ne.s32.totalorder %s50_s6, %s1709_s0  ;;  %p1715_p3 = scmp.lt.s32.totalorder %s1709_s0, %s1709_s0 }
  0x27   :  { %p1716_p4 = por %p1715_p3, %p1714_p2 }
  0x29   :  { %p1717_p5 = pnand %p1716_p4, %p1710_p1 }
  0x2b   :  { %1720 = shalt.err (!%p1717_p5)
}
  0x2c   :  { %s1733_s7 = smov 32   ;;  %s1734_s8 = smov 2  }
  0x2d   :  { %55 = dma.hbm_to_vmem [thread:$0]  %s1838_s3, 256, %s50_s6, [#allocation8], %s1733_s7, %s1733_s7, %s1734_s8  }
  0x2e   :  { %1721 = dma.done.wait [#allocation3], 128  }
  0x2f   :  { %1722 = vsyncadd [#allocation3], 4294967168 }
  0x30   :  { %1723 = dma.done.wait [#allocation5], 32896  }
  0x31   :  { %1724 = vsyncadd [#allocation5], 4294934400 }
  0x32   :  { %1725 = dma.done.wait [#allocation8], 256  }
  0x33   :  { %1726 = vsyncadd [#allocation8], 4294967040  ;;  %v1735_v0 = vmov 0.0   ;;  %vm1736_vm0 = vmmov 0   ;;  %v70_v1 = vld [vmem:[#allocation4] sm:$0xff]  ;;  %vm75_vm1 = vcmask 64512  }
  0x34   :  { %1393 = vmatprep.subr.bf16.mxu0 %v1735_v0  ;;  %1395 = vmatprep.mubr.msk.bf16.mxu0 %vm1736_vm0, %v1735_v0  ;;  %v1498_v2 = vld [vmem:[#allocation6] ss:$8 sps:$4 sm:$0xff]   ;;  %v1499_v3 = vld [vmem:[#allocation6 + $0x174] ss:$8 sps:$4 sm:$0xff]   ;;  %v1501_v4 = vld [vmem:[#allocation6 + $0x170] ss:$8 sps:$4 sm:$0xff]  }
  0x35   :  { %72 = vrot.lane.b32.xlu0 %v70_v1, %s1731_s28  ;;  %1394 = vmatpush3.bf16.msra.mxu0 %v1498_v2  ;;  %v1502_v5 = vld [vmem:[#allocation6 + $0x164] ss:$8 sps:$4 sm:$0xff]   ;;  %v1504_v6 = vld [vmem:[#allocation6 + $0x160] ss:$8 sps:$4 sm:$0xff]   ;;  %v1505_v7 = vld [vmem:[#allocation6 + $0x154] ss:$8 sps:$4 sm:$0xff]  }
  0x36   :  { %249 = vmatprep.subr.bf16.mxu1 %v1499_v3  ;;  %v1507_v8 = vld [vmem:[#allocation6 + $0x150] ss:$8 sps:$4 sm:$0xff]   ;;  %v1508_v9 = vld [vmem:[#allocation6 + $0x144] ss:$8 sps:$4 sm:$0xff]   ;;  %vm93_vm2 = vcmask 130048   ;;  %v1737_v21 = vmov 0  }
  0x37   :  { %250 = vmatpush1.bf16.msra.mxu1 %v1501_v4  ;;  %v69_v10 = vld [vmem:[#allocation2] sm:$0xff]  ;;  %v1510_v14 = vld [vmem:[#allocation6 + $0x140] ss:$8 sps:$4 sm:$0xff]   ;;  %v1514_v17 = vld [vmem:[#allocation6 + $0x124] ss:$8 sps:$4 sm:$0xff]   ;;  %281 = vmatprep.mubr.bf16.mxu1 %v1737_v21  ;;  %s1739_s2 = smov 4  }
  0x38   :  { %251 = vmatprep.subr.bf16.mxu1 %v1502_v5  ;;  %v1511_v15 = vld [vmem:[#allocation6 + $0x134] ss:$8 sps:$4 sm:$0xff]   ;;  %v1513_v16 = vld [vmem:[#allocation6 + $0x130] ss:$8 sps:$4 sm:$0xff]   ;;  %v1516_v18 = vld [vmem:[#allocation6 + $0x120] ss:$8 sps:$4 sm:$0xff]   ;;  %1495 = vset.pattern.permute.xlu0 %v1737_v21 }
  0x39   :  { %v1517_v19 = vld [vmem:[#allocation6 + $0x114] ss:$8 sps:$4 sm:$0xff]   ;;  %v1519_v20 = vld [vmem:[#allocation6 + $0x110] ss:$8 sps:$4 sm:$0xff]   ;;  %v1520_v22 = vld [vmem:[#allocation6 + $0x104] ss:$8 sps:$4 sm:$0xff]  }
  0x3a   :  { %v1522_v23 = vld [vmem:[#allocation6 + $0x100] ss:$8 sps:$4 sm:$0xff]   ;;  %v1523_v24 = vld [vmem:[#allocation6 + $0x270] ss:$8 sps:$4 sm:$0xff]   ;;  %v1525_v25 = vld [vmem:[#allocation6 + $0x274] ss:$8 sps:$4 sm:$0xff]  }
  0x3b   :  { %252 = vmatpush1.bf16.msra.mxu1 %v1504_v6  ;;  %v1528_v26 = vld [vmem:[#allocation6 + $0x264] ss:$8 sps:$4 sm:$0xff]   ;;  %500 = vmatprep.subr.bf16.mxu0 %v1525_v25  ;;  %v1526_v27 = vld [vmem:[#allocation6 + $0x260] ss:$8 sps:$4 sm:$0xff]   ;;  %v1531_v28 = vld [vmem:[#allocation6 + $0x254] ss:$8 sps:$4 sm:$0xff]  }
  0x3c   :  { %253 = vmatprep.subr.bf16.mxu1 %v1505_v7  ;;  %v1529_v29 = vld [vmem:[#allocation6 + $0x250] ss:$8 sps:$4 sm:$0xff]   ;;  %v1534_v30 = vld [vmem:[#allocation6 + $0x244] ss:$8 sps:$4 sm:$0xff]   ;;  %v1532_v31 = vld [vmem:[#allocation6 + $0x240] ss:$8 sps:$4 sm:$0xff]   ;;  %v159_v7 = vlaneseq }
  0x3d   :  { %v1537_v32 = vld [vmem:[#allocation6 + $0x234] ss:$8 sps:$4 sm:$0xff]   ;;  %v1535_v33 = vld [vmem:[#allocation6 + $0x230] ss:$8 sps:$4 sm:$0xff]   ;;  %v1540_v34 = vld [vmem:[#allocation6 + $0x224] ss:$8 sps:$4 sm:$0xff]  }
  0x3e   :  { %v1538_v35 = vld [vmem:[#allocation6 + $0x220] ss:$8 sps:$4 sm:$0xff]   ;;  %v1543_v36 = vld [vmem:[#allocation6 + $0x214] ss:$8 sps:$4 sm:$0xff]   ;;  %v1541_v37 = vld [vmem:[#allocation6 + $0x210] ss:$8 sps:$4 sm:$0xff]  }
  0x3f   :  { %254 = vmatpush1.bf16.msra.mxu1 %v1507_v8  ;;  %v1546_v38 = vld [vmem:[#allocation6 + $0x204] ss:$8 sps:$4 sm:$0xff]   ;;  %v1544_v39 = vld [vmem:[#allocation6 + $0x200] ss:$8 sps:$4 sm:$0xff]   ;;  %v1549_v40 = vld [vmem:[#allocation6 + $0x2f4] ss:$8 sps:$4 sm:$0xff]  }
  0x40   :  { %255 = vmatprep.subr.bf16.mxu1 %v1508_v9  ;;  %v1547_v41 = vld [vmem:[#allocation6 + $0x2f0] ss:$8 sps:$4 sm:$0xff]   ;;  %v1552_v42 = vld [vmem:[#allocation6 + $0x2e4] ss:$8 sps:$4 sm:$0xff]   ;;  %v1550_v43 = vld [vmem:[#allocation6 + $0x2e0] ss:$8 sps:$4 sm:$0xff]  }
  0x41   :  { %v1555_v44 = vld [vmem:[#allocation6 + $0x2d4] ss:$8 sps:$4 sm:$0xff]   ;;  %v1553_v45 = vld [vmem:[#allocation6 + $0x2d0] ss:$8 sps:$4 sm:$0xff]   ;;  %v1228_v46 = vld [vmem:[#allocation7] ss:$0 sm:$0xff] }
  0x42   :  { %v1558_v54 = vld [vmem:[#allocation6 + $0x2c4] ss:$8 sps:$4 sm:$0xff]   ;;  %v1556_v55 = vld [vmem:[#allocation6 + $0x2c0] ss:$8 sps:$4 sm:$0xff]   ;;  %v1561_v56 = vld [vmem:[#allocation6 + $0x2b4] ss:$8 sps:$4 sm:$0xff]  }
  0x43   :  { %256 = vmatpush1.bf16.msra.mxu1 %v1510_v14  ;;  %v1559_v57 = vld [vmem:[#allocation6 + $0x2b0] ss:$8 sps:$4 sm:$0xff]   ;;  %v1564_v58 = vld [vmem:[#allocation6 + $0x2a4] ss:$8 sps:$4 sm:$0xff]   ;;  %v1562_v59 = vld [vmem:[#allocation6 + $0x2a0] ss:$8 sps:$4 sm:$0xff]  }
  0x44   :  { %257 = vmatprep.subr.bf16.mxu1 %v1511_v15  ;;  %v1567_v60 = vld [vmem:[#allocation6 + $0x294] ss:$8 sps:$4 sm:$0xff]   ;;  %v1565_v61 = vld [vmem:[#allocation6 + $0x290] ss:$8 sps:$4 sm:$0xff]   ;;  %v1570_v62 = vld [vmem:[#allocation6 + $0x284] ss:$8 sps:$4 sm:$0xff]  }
  0x45   :  { %v1568_v63 = vld [vmem:[#allocation6 + $0x280] ss:$8 sps:$4 sm:$0xff]   ;;  %v1571_v1 = vld [vmem:[#allocation6 + $0x3f0] ss:$8 sps:$4 sm:$0xff]   ;;  %v160_v8 = vshrl.u32 %v159_v7, 7  ;;  %s1740_s3 = smov 64  }
  0x46   :  { %v1572_v2 = vld [vmem:[#allocation6 + $0x370] ss:$8 sps:$4 sm:$0xff]   ;;  %v1573_v3 = vld [vmem:[#allocation6 + $0x3e0] ss:$8 sps:$4 sm:$0xff]   ;;  %s1741_s11 = smov 66   ;;  %s1742_s12 = smov 70  }
  0x47   :  { %258 = vmatpush1.bf16.msra.mxu1 %v1513_v16  ;;  %v1574_v4 = vld [vmem:[#allocation6 + $0x360] ss:$8 sps:$4 sm:$0xff]   ;;  %v1575_v5 = vld [vmem:[#allocation6 + $0x3d0] ss:$8 sps:$4 sm:$0xff]   ;;  %v161_v9 = vsub.s32 0, %v160_v8  ;;  %vm1198_vm3 = vcmask 15360  }
  0x48   :  { %259 = vmatprep.subr.bf16.mxu1 %v1514_v17  ;;  %v1576_v6 = vld [vmem:[#allocation6 + $0x350] ss:$8 sps:$4 sm:$0xff]   ;;  %v1578_v25 = vld [vmem:[#allocation6 + $0x340] ss:$8 sps:$4 sm:$0xff]   ;;  %vm1209_vm4 = vcmask 31760   ;;  %vm1214_vm5 = vcmask 48160  }
  0x49   :  { %v1601_v7 = vld [vmem:[#allocation6 + $0x510] ss:$8 sps:$4 sm:$0xff]   ;;  %vm1219_vm6 = vcmask 64560  }
  0x4b   :  { %260 = vmatpush1.bf16.msra.mxu1 %v1516_v18 }
  0x4c   :  { %261 = vmatprep.subr.bf16.mxu1 %v1517_v19 }
  0x4f   :  { %262 = vmatpush1.bf16.msra.mxu1 %v1519_v20 }
  0x50   :  { %263 = vmatprep.subr.bf16.mxu1 %v1520_v22 }
  0x53   :  { %264 = vmatpush1.bf16.msra.mxu1 %v1522_v23 }
  0x54   :  { %1335 = vmatprep.subr.bf16.mxu1 %v1571_v1 }
  0xa7   :  { %v73_v11 = vpop.permute.xlu0 %72 }
  0xa8   :  { %v76_v12 = vsel %vm75_vm1, %v69_v10, %v73_v11  ;;  %v157_v10 = vld [vmem:[#allocation7 + $0x2] sm:$0x3]  ;;  %v165_v11 = vsub.s32 1, %v160_v8 }
  0xa9   :  { %v77_v13 = vpack.c.bf16 %v76_v12, %v76_v12  ;;  %v162_v12 = vrot.slane %v157_v10, %v161_v9  ;;  %v1602_v8 = vld [vmem:[#allocation6 + $0x500] ss:$8 sps:$4 sm:$0xff]  }
  0xab   :  { %1396 = vmatmul.mubr.msk.bf16.vlgmr.msra.gmra.mxu0 %vm93_vm2, %v77_v13  ;;  %v166_v13 = vrot.slane %v157_v10, %v165_v11  ;;  %v1604_v10 = vld [vmem:[#allocation6 + $0x660] ss:$8 sps:$4 sm:$0xff]  }
  0xac   :  { %501 = vmatpush1.bf16.msra.mxu0 %v1523_v24  ;;  %v1577_v24 = vld [vmem:[#allocation6 + $0x3c0] ss:$8 sps:$4 sm:$0xff]  }
  0xad   :  { %502 = vmatprep.subr.bf16.mxu0 %v1528_v26  ;;  %v1579_v26 = vld [vmem:[#allocation6 + $0x3b0] ss:$8 sps:$4 sm:$0xff]  }
  0xb0   :  { %503 = vmatpush1.bf16.msra.mxu0 %v1526_v27  ;;  %v1580_v27 = vld [vmem:[#allocation6 + $0x330] ss:$8 sps:$4 sm:$0xff]  }
  0xb1   :  { %504 = vmatprep.subr.bf16.mxu0 %v1531_v28  ;;  %v1581_v28 = vld [vmem:[#allocation6 + $0x3a0] ss:$8 sps:$4 sm:$0xff]  }
  0xb4   :  { %505 = vmatpush1.bf16.msra.mxu0 %v1529_v29  ;;  %v1582_v29 = vld [vmem:[#allocation6 + $0x320] ss:$8 sps:$4 sm:$0xff]  }
  0xb5   :  { %506 = vmatprep.subr.bf16.mxu0 %v1534_v30  ;;  %v1583_v30 = vld [vmem:[#allocation6 + $0x390] ss:$8 sps:$4 sm:$0xff]  }
  0xb8   :  { %507 = vmatpush1.bf16.msra.mxu0 %v1532_v31  ;;  %v1584_v31 = vld [vmem:[#allocation6 + $0x310] ss:$8 sps:$4 sm:$0xff]  }
  0xb9   :  { %508 = vmatprep.subr.bf16.mxu0 %v1537_v32  ;;  %v1585_v32 = vld [vmem:[#allocation6 + $0x380] ss:$8 sps:$4 sm:$0xff]  }
  0xbc   :  { %509 = vmatpush1.bf16.msra.mxu0 %v1535_v33  ;;  %v1586_v33 = vld [vmem:[#allocation6 + $0x300] ss:$8 sps:$4 sm:$0xff]  }
  0xbd   :  { %510 = vmatprep.subr.bf16.mxu0 %v1540_v34  ;;  %v328_v34 = vld [vmem:[#allocation7 + $0x4] sm:$0x3] }
  0xc0   :  { %511 = vmatpush1.bf16.msra.mxu0 %v1538_v35  ;;  %v333_v35 = vrot.slane %v328_v34, %v161_v9  ;;  %v1603_v9 = vld [vmem:[#allocation6 + $0x670] ss:$8 sps:$4 sm:$0xff]  }
  0xc1   :  { %512 = vmatprep.subr.bf16.mxu0 %v1543_v36  ;;  %v337_v36 = vrot.slane %v328_v34, %v165_v11  ;;  %v1605_v11 = vld [vmem:[#allocation6 + $0x650] ss:$8 sps:$4 sm:$0xff]  }
  0xc4   :  { %513 = vmatpush1.bf16.msra.mxu0 %v1541_v37 }
  0xc5   :  { %514 = vmatprep.subr.bf16.mxu0 %v1546_v38 }
  0xc8   :  { %515 = vmatpush1.bf16.msra.mxu0 %v1544_v39 }
  0xc9   :  { %516 = vmatprep.subr.bf16.mxu0 %v1549_v40 }
  0xcc   :  { %517 = vmatpush2.bf16.msra.mxu0 %v1547_v41 }
  0xcd   :  { %518 = vmatprep.subr.bf16.mxu0 %v1552_v42 }
  0xd0   :  { %519 = vmatpush2.bf16.msra.mxu0 %v1550_v43 }
  0xd1   :  { %520 = vmatprep.subr.bf16.mxu0 %v1555_v44 }
  0xd4   :  { %521 = vmatpush2.bf16.msra.mxu0 %v1553_v45 }
  0xd5   :  { %522 = vmatprep.subr.bf16.mxu0 %v1558_v54  ;;  %v1594_v54 = vld [vmem:[#allocation6 + $0x400] ss:$8 sps:$4 sm:$0xff]  }
  0xd8   :  { %523 = vmatpush2.bf16.msra.mxu0 %v1556_v55  ;;  %v1595_v55 = vld [vmem:[#allocation6 + $0x570] ss:$8 sps:$4 sm:$0xff]  }
  0xd9   :  { %524 = vmatprep.subr.bf16.mxu0 %v1561_v56  ;;  %v1596_v56 = vld [vmem:[#allocation6 + $0x560] ss:$8 sps:$4 sm:$0xff]  }
  0xdc   :  { %525 = vmatpush2.bf16.msra.mxu0 %v1559_v57  ;;  %v1597_v57 = vld [vmem:[#allocation6 + $0x550] ss:$8 sps:$4 sm:$0xff]  }
  0xdd   :  { %526 = vmatprep.subr.bf16.mxu0 %v1564_v58 }
  0xe0   :  { %527 = vmatpush2.bf16.msra.mxu0 %v1562_v59  ;;  %v1279_v59 = vld [vmem:[#allocation7 + $0x6] ss:$0 sm:$0xff] }
  0xe1   :  { %528 = vmatprep.subr.bf16.mxu0 %v1567_v60 }
  0xe4   :  { %529 = vmatpush2.bf16.msra.mxu0 %v1565_v61 }
  0xe5   :  { %530 = vmatprep.subr.bf16.mxu0 %v1570_v62 }
  0xe8   :  { %531 = vmatpush2.bf16.msra.mxu0 %v1568_v63 }
  0xe9   :  { %1419 = vmatprep.subr.bf16.mxu0 %v1735_v0 }
 0x16b   :  { %v131_v47 = vpop.f32.mrf.mxu0 }
 0x16c   :  { %v132_v48 = vadd.f32 %v1228_v46, %v131_v47  ;;  %v1587_v46 = vld [vmem:[#allocation6 + $0x470] ss:$8 sps:$4 sm:$0xff]  }
 0x16d   :  { %v1397_v49 = vpop.f32.mrf.mxu0 }
 0x16e   :  { %1619 = vtanh.f32 %v132_v48  ;;  %v1588_v48 = vld [vmem:[#allocation6 + $0x460] ss:$8 sps:$4 sm:$0xff]   ;;  %v1589_v49 = vld [vmem:[#allocation6 + $0x450] ss:$8 sps:$4 sm:$0xff]  }
 0x16f   :  { %v134_v50 = vpop.f32.mrf.mxu0 }
 0x170   :  { %v1590_v50 = vld [vmem:[#allocation6 + $0x440] ss:$8 sps:$4 sm:$0xff]  }
 0x171   :  { %v1398_v51 = vpop.f32.mrf.mxu0 }
 0x172   :  { %v1591_v51 = vld [vmem:[#allocation6 + $0x430] ss:$8 sps:$4 sm:$0xff]  }
 0x17b   :  { %v1620_v52 = vpop.eup %1619 }
 0x17c   :  { %v138_v53 = vpack.c.bf16 %v1620_v52, %v1620_v52  ;;  %v1592_v52 = vld [vmem:[#allocation6 + $0x420] ss:$8 sps:$4 sm:$0xff]  }
 0x17e   :  { %282 = vmatmul.mubr.bf16.vlgmr.msra.gmra.mxu1 %v138_v53  ;;  %v1593_v53 = vld [vmem:[#allocation6 + $0x410] ss:$8 sps:$4 sm:$0xff]  }
 0x17f   :  { %1336 = vmatpush3.bf16.msra.mxu1 %v1572_v2 }
 0x180   :  { %1337 = vmatprep.subr.bf16.mxu1 %v1573_v3 }
 0x183   :  { %1338 = vmatpush3.bf16.msra.mxu1 %v1574_v4  ;;  %v1598_v4 = vld [vmem:[#allocation6 + $0x540] ss:$8 sps:$4 sm:$0xff]  }
 0x184   :  { %1339 = vmatprep.subr.bf16.mxu1 %v1575_v5  ;;  %v1599_v5 = vld [vmem:[#allocation6 + $0x530] ss:$8 sps:$4 sm:$0xff]  }
 0x187   :  { %1340 = vmatpush3.bf16.msra.mxu1 %v1576_v6  ;;  %v1600_v6 = vld [vmem:[#allocation6 + $0x520] ss:$8 sps:$4 sm:$0xff]  }
 0x188   :  { %1341 = vmatprep.subr.bf16.mxu1 %v1577_v24  ;;  %v1610_v24 = vld [vmem:[#allocation6 + $0x600] ss:$8 sps:$4 sm:$0xff]  }
 0x18b   :  { %1342 = vmatpush3.bf16.msra.mxu1 %v1578_v25  ;;  %v1611_v25 = vld [vmem:[#allocation6 + $0x770] ss:$8 sps:$4 sm:$0xff]  }
 0x18c   :  { %1343 = vmatprep.subr.bf16.mxu1 %v1579_v26  ;;  %v1612_v26 = vld [vmem:[#allocation6 + $0x760] ss:$8 sps:$4 sm:$0xff]  }
 0x18f   :  { %1344 = vmatpush3.bf16.msra.mxu1 %v1580_v27  ;;  %v1613_v27 = vld [vmem:[#allocation6 + $0x750] ss:$8 sps:$4 sm:$0xff]  }
 0x190   :  { %1345 = vmatprep.subr.bf16.mxu1 %v1581_v28  ;;  %v1305_v28 = vld [vmem:[#allocation7 + $0xa] ss:$0 sm:$0xff] }
 0x193   :  { %1346 = vmatpush3.bf16.msra.mxu1 %v1582_v29 }
 0x194   :  { %1347 = vmatprep.subr.bf16.mxu1 %v1583_v30 }
 0x197   :  { %1348 = vmatpush3.bf16.msra.mxu1 %v1584_v31 }
 0x198   :  { %1349 = vmatprep.subr.bf16.mxu1 %v1585_v32 }
 0x19b   :  { %1350 = vmatpush3.bf16.msra.mxu1 %v1586_v33 }
 0x19c   :  { %1399 = vmatprep.subr.bf16.mxu1 %v1735_v0 }
 0x23e   :  { %v283_v14 = vpop.f32.mrf.mxu1 }
 0x23f   :  { %v284_v15 = vadd.f32 %v283_v14, %v162_v12  ;;  %v1296_v12 = vld [vmem:[#allocation7 + $0x8] ss:$0 sm:$0xff] }
 0x240   :  { %v285_v16 = vpop.f32.mrf.mxu1 }
 0x241   :  { %v286_v17 = vadd.f32 %v285_v16, %v166_v13  ;;  %1621 = vtanh.f32 %v284_v15 }
 0x242   :  { %v287_v18 = vpop.f32.mrf.mxu1 }
 0x243   :  { %1623 = vtanh.f32 %v286_v17 }
 0x244   :  { %v288_v19 = vpop.f32.mrf.mxu1 }
 0x24e   :  { %v1622_v20 = vpop.eup %1621 }
 0x24f   :  { %v292_v23 = vpack.c.bf16 %v1622_v20, %v1622_v20  ;;  %v1606_v20 = vld [vmem:[#allocation6 + $0x640] ss:$8 sps:$4 sm:$0xff]  }
 0x250   :  { %v1624_v21 = vpop.eup %1623 }
 0x251   :  { %v293_v22 = vpack.c.bf16 %v1624_v21, %v1624_v21  ;;  %v1607_v21 = vld [vmem:[#allocation6 + $0x630] ss:$8 sps:$4 sm:$0xff]  }
 0x253   :  { %532 = vmatprep.mubr.bf16.mxu0 %v293_v22  ;;  %v1608_v22 = vld [vmem:[#allocation6 + $0x620] ss:$8 sps:$4 sm:$0xff]  }
 0x254   :  { %533 = vmatmul.mubr.bf16.vlgmr.msra.gmra.mxu0 %v292_v23  ;;  %v1609_v23 = vld [vmem:[#allocation6 + $0x610] ss:$8 sps:$4 sm:$0xff]  }
 0x255   :  { %1435 = vmatprep.mubr.msk.bf16.mxu0 %vm1736_vm0, %v1735_v0  ;;  %1420 = vmatpush3.bf16.msra.mxu0 %v1595_v55 }
 0x256   :  { %1421 = vmatprep.subr.bf16.mxu0 %v1735_v0 }
 0x259   :  { %1422 = vmatpush3.bf16.msra.mxu0 %v1596_v56 }
 0x25a   :  { %1423 = vmatprep.subr.bf16.mxu0 %v1735_v0 }
 0x25d   :  { %1424 = vmatpush3.bf16.msra.mxu0 %v1597_v57 }
 0x25e   :  { %1425 = vmatprep.subr.bf16.mxu0 %v1735_v0 }
 0x261   :  { %1426 = vmatpush3.bf16.msra.mxu0 %v1598_v4 }
 0x262   :  { %1427 = vmatprep.subr.bf16.mxu0 %v1735_v0 }
 0x265   :  { %1428 = vmatpush3.bf16.msra.mxu0 %v1599_v5 }
 0x266   :  { %1429 = vmatprep.subr.bf16.mxu0 %v1735_v0 }
 0x269   :  { %1430 = vmatpush3.bf16.msra.mxu0 %v1600_v6 }
 0x26a   :  { %1431 = vmatprep.subr.bf16.mxu0 %v1735_v0 }
 0x26d   :  { %1432 = vmatpush3.bf16.msra.mxu0 %v1601_v7 }
 0x26e   :  { %1433 = vmatprep.subr.bf16.mxu0 %v1735_v0 }
 0x271   :  { %1434 = vmatpush3.bf16.msra.mxu0 %v1602_v8 }
 0x272   :  { %1459 = vmatprep.subr.bf16.mxu0 %v1735_v0 }
 0x314   :  { %v534_v37 = vpop.f32.mrf.mxu0 }
 0x315   :  { %v535_v38 = vadd.f32 %v534_v37, %v333_v35  ;;  %v1615_v37 = vld [vmem:[#allocation6 + $0x730] ss:$8 sps:$4 sm:$0xff]  }
 0x316   :  { %v536_v39 = vpop.f32.mrf.mxu0 }
 0x317   :  { %v537_v40 = vadd.f32 %v536_v39, %v337_v36  ;;  %1625 = vtanh.f32 %v535_v38  ;;  %v1614_v36 = vld [vmem:[#allocation6 + $0x740] ss:$8 sps:$4 sm:$0xff]   ;;  %v1617_v39 = vld [vmem:[#allocation6 + $0x710] ss:$8 sps:$4 sm:$0xff]  }
 0x318   :  { %v538_v41 = vpop.f32.mrf.mxu0  ;;  %v1616_v38 = vld [vmem:[#allocation6 + $0x720] ss:$8 sps:$4 sm:$0xff]  }
 0x319   :  { %1627 = vtanh.f32 %v537_v40  ;;  %v1618_v40 = vld [vmem:[#allocation6 + $0x700] ss:$8 sps:$4 sm:$0xff]   ;;  %v1314_v41 = vld [vmem:[#allocation7 + $0xc] ss:$0 sm:$0xff] }
 0x31a   :  { %v539_v42 = vpop.f32.mrf.mxu0 }
 0x324   :  { %v1626_v43 = vpop.eup %1625 }
 0x325   :  { %v543_v47 = vpack.c.bf16 %v1626_v43, %v1626_v43 }
 0x326   :  { %v1628_v44 = vpop.eup %1627 }
 0x327   :  { %v544_v45 = vpack.c.bf16 %v1628_v44, %v1628_v44 }
 0x329   :  { %714 = vmatprep.mubr.bf16.mxu1 %v544_v45 }
 0x32a   :  { %715 = vmatmul.mubr.bf16.vlgmr.msra.gmra.mxu1 %v543_v47 }
 0x32b   :  { %1400 = vmatpush3.bf16.msra.mxu1 %v1587_v46  ;;  %1415 = vmatprep.mubr.msk.bf16.mxu1 %vm1736_vm0, %v1735_v0 }
 0x32c   :  { %1401 = vmatprep.subr.bf16.mxu1 %v1735_v0 }
 0x32f   :  { %1402 = vmatpush3.bf16.msra.mxu1 %v1588_v48 }
 0x330   :  { %1403 = vmatprep.subr.bf16.mxu1 %v1735_v0 }
 0x333   :  { %1404 = vmatpush3.bf16.msra.mxu1 %v1589_v49  ;;  %v1738_v49 = vmov 1  }
 0x334   :  { %1405 = vmatprep.subr.bf16.mxu1 %v1735_v0  ;;  %1496 = vset.pattern.permute.xlu1 %v1738_v49 }
 0x337   :  { %1406 = vmatpush3.bf16.msra.mxu1 %v1590_v50  ;;  %v1323_v50 = vld [vmem:[#allocation7 + $0xe] ss:$0 sm:$0xff] }
 0x338   :  { %1407 = vmatprep.subr.bf16.mxu1 %v1735_v0 }
 0x33b   :  { %1408 = vmatpush3.bf16.msra.mxu1 %v1591_v51 }
 0x33c   :  { %1409 = vmatprep.subr.bf16.mxu1 %v1735_v0 }
 0x33f   :  { %1410 = vmatpush3.bf16.msra.mxu1 %v1592_v52 }
 0x340   :  { %1411 = vmatprep.subr.bf16.mxu1 %v1735_v0 }
 0x343   :  { %1412 = vmatpush3.bf16.msra.mxu1 %v1593_v53 }
 0x344   :  { %1413 = vmatprep.subr.bf16.mxu1 %v1735_v0 }
 0x347   :  { %1414 = vmatpush3.bf16.msra.mxu1 %v1594_v54 }
 0x348   :  { %1439 = vmatprep.subr.bf16.mxu1 %v1735_v0 }
 0x3ea   :  { %v1351_v58 = vpop.f32.mrf.mxu1 }
 0x3ec   :  { %v1352_v60 = vpop.f32.mrf.mxu1 }
 0x3ed   :  { %v1353_v61 = vadd.f32 %v1352_v60, %v1351_v58 }
 0x3ee   :  { %v1354_v62 = vpop.f32.mrf.mxu1 }
 0x3ef   :  { %v717_v63 = vadd.f32 %v1353_v61, %v1279_v59 }
 0x3f0   :  { %v1355_v1 = vpop.f32.mrf.mxu1 }
 0x3f1   :  { %1629 = vtanh.f32 %v717_v63 }
 0x3fe   :  { %v1630_v2 = vpop.eup %1629 }
 0x3ff   :  { %v723_v3 = vpack.c.bf16 %v1630_v2, %v1630_v2 }
 0x401   :  { %1416 = vmatmul.mubr.bf16.vlgmr.msra.gmra.mxu1 %v723_v3 }
 0x402   :  { %1455 = vmatprep.mubr.msk.bf16.mxu1 %vm1736_vm0, %v1735_v0  ;;  %1440 = vmatpush3.bf16.msra.mxu1 %v1603_v9 }
 0x403   :  { %1441 = vmatprep.subr.bf16.mxu1 %v1735_v0 }
 0x406   :  { %1442 = vmatpush3.bf16.msra.mxu1 %v1604_v10 }
 0x407   :  { %1443 = vmatprep.subr.bf16.mxu1 %v1735_v0 }
 0x40a   :  { %1444 = vmatpush3.bf16.msra.mxu1 %v1605_v11 }
 0x40b   :  { %1445 = vmatprep.subr.bf16.mxu1 %v1735_v0 }
 0x40e   :  { %1446 = vmatpush3.bf16.msra.mxu1 %v1606_v20 }
 0x40f   :  { %1447 = vmatprep.subr.bf16.mxu1 %v1735_v0 }
 0x412   :  { %1448 = vmatpush3.bf16.msra.mxu1 %v1607_v21 }
 0x413   :  { %1449 = vmatprep.subr.bf16.mxu1 %v1735_v0 }
 0x416   :  { %1450 = vmatpush3.bf16.msra.mxu1 %v1608_v22 }
 0x417   :  { %1451 = vmatprep.subr.bf16.mxu1 %v1735_v0 }
 0x41a   :  { %1452 = vmatpush3.bf16.msra.mxu1 %v1609_v23 }
 0x41b   :  { %1453 = vmatprep.subr.bf16.mxu1 %v1735_v0 }
 0x41e   :  { %1454 = vmatpush3.bf16.msra.mxu1 %v1610_v24 }
 0x4c1   :  { %v831_v13 = vpop.f32.mrf.mxu1 }
 0x4c2   :  { %v832_v14 = vadd.f32 %v1296_v12, %v831_v13 }
 0x4c3   :  { %v1417_v15 = vpop.f32.mrf.mxu1 }
 0x4c4   :  { %1631 = vtanh.f32 %v832_v14 }
 0x4c5   :  { %v834_v16 = vpop.f32.mrf.mxu1 }
 0x4c7   :  { %v1418_v17 = vpop.f32.mrf.mxu1 }
 0x4d1   :  { %v1632_v18 = vpop.eup %1631 }
 0x4d2   :  { %v838_v19 = vpack.c.bf16 %v1632_v18, %v1632_v18 }
 0x4d4   :  { %1436 = vmatmul.mubr.bf16.vlgmr.msra.gmra.mxu0 %v838_v19 }
 0x4d5   :  { %1475 = vmatprep.mubr.msk.bf16.mxu0 %vm1736_vm0, %v1735_v0  ;;  %1460 = vmatpush3.bf16.msra.mxu0 %v1611_v25 }
 0x4d6   :  { %1461 = vmatprep.subr.bf16.mxu0 %v1735_v0 }
 0x4d9   :  { %1462 = vmatpush3.bf16.msra.mxu0 %v1612_v26 }
 0x4da   :  { %1463 = vmatprep.subr.bf16.mxu0 %v1735_v0 }
 0x4dd   :  { %1464 = vmatpush3.bf16.msra.mxu0 %v1613_v27 }
 0x4de   :  { %1465 = vmatprep.subr.bf16.mxu0 %v1735_v0 }
 0x4e1   :  { %1466 = vmatpush3.bf16.msra.mxu0 %v1614_v36 }
 0x4e2   :  { %1467 = vmatprep.subr.bf16.mxu0 %v1735_v0 }
 0x4e5   :  { %1468 = vmatpush3.bf16.msra.mxu0 %v1615_v37 }
 0x4e6   :  { %1469 = vmatprep.subr.bf16.mxu0 %v1735_v0 }
 0x4e9   :  { %1470 = vmatpush3.bf16.msra.mxu0 %v1616_v38 }
 0x4ea   :  { %1471 = vmatprep.subr.bf16.mxu0 %v1735_v0 }
 0x4ed   :  { %1472 = vmatpush3.bf16.msra.mxu0 %v1617_v39 }
 0x4ee   :  { %1473 = vmatprep.subr.bf16.mxu0 %v1735_v0 }
 0x4f1   :  { %1474 = vmatpush3.bf16.msra.mxu0 %v1618_v40 }
 0x594   :  { %v946_v29 = vpop.f32.mrf.mxu0 }
 0x595   :  { %v947_v30 = vadd.f32 %v1305_v28, %v946_v29 }
 0x596   :  { %v1437_v31 = vpop.f32.mrf.mxu0 }
 0x597   :  { %1633 = vtanh.f32 %v947_v30 }
 0x598   :  { %v949_v32 = vpop.f32.mrf.mxu0 }
 0x59a   :  { %v1438_v33 = vpop.f32.mrf.mxu0 }
 0x5a4   :  { %v1634_v34 = vpop.eup %1633 }
 0x5a5   :  { %v953_v35 = vpack.c.bf16 %v1634_v34, %v1634_v34 }
 0x5a7   :  { %1456 = vmatmul.mubr.bf16.vlgmr.msra.gmra.mxu1 %v953_v35 }
 0x667   :  { %v1061_v42 = vpop.f32.mrf.mxu1 }
 0x668   :  { %v1062_v43 = vadd.f32 %v1314_v41, %v1061_v42 }
 0x669   :  { %v1457_v44 = vpop.f32.mrf.mxu1 }
 0x66a   :  { %1635 = vtanh.f32 %v1062_v43 }
 0x66b   :  { %v1064_v45 = vpop.f32.mrf.mxu1 }
 0x66d   :  { %v1458_v46 = vpop.f32.mrf.mxu1 }
 0x677   :  { %v1636_v47 = vpop.eup %1635 }
 0x678   :  { %v1068_v48 = vpack.c.bf16 %v1636_v47, %v1636_v47 }
 0x67a   :  { %1476 = vmatmul.mubr.bf16.vlgmr.msra.gmra.mxu0 %v1068_v48 }
 0x73a   :  { %v1176_v51 = vpop.f32.mrf.mxu0 }
 0x73b   :  { %v1177_v52 = vadd.f32 %v1323_v50, %v1176_v51 }
 0x73c   :  { %v1477_v53 = vpop.f32.mrf.mxu0 }
 0x73d   :  { %v1332_v54 = vmul.f32 -1.442695, %v1177_v52 }
 0x73e   :  { %v1179_v0 = vpop.f32.mrf.mxu0 }
 0x73f   :  { %1637 = vpow2.f32 %v1332_v54 }
 0x740   :  { %v1478_v55 = vpop.f32.mrf.mxu0 }
 0x74c   :  { %v1638_v56 = vpop.eup %1637 }
 0x74d   :  { %v1185_v57 = vadd.f32 1.0, %v1638_v56 }
 0x74f   :  { %1639 = vrcp.f32 %v1185_v57 }
 0x75c   :  { %v1640_v58 = vpop.eup %1639 }
 0x75d   :  { %1201 = vperm.xlu1 %1496, %v1640_v58   ;;  %1190 = vperm.xlu0 %1495, %v1640_v58  }
 0x761   :  { %1211 = vrot.lane.b32.xlu0 %v1640_v58, %s1739_s2 }
 0x762   :  { %1497 = vset.pattern.permute.xlu0 %v1738_v49 }
 0x7d8   :  { %v1191_v59 = vpop.permute.xlu0 %1190  ;;  %v1202_v61 = vpop.permute.xlu1 %1201 }
 0x7d9   :  { %v1193_v60 = vmul.f32 %v1640_v58, %v1191_v59  ;;  %v1204_v62 = vmul.f32 %v1640_v58, %v1202_v61 }
 0x7db   :  { %1195 = vrot.lane.b32.xlu1 %v1193_v60, %s1740_s3 }
 0x7dc   :  { %v1212_v2 = vpop.permute.xlu0 %1211 }
 0x7df   :  { %1206 = vrot.lane.b32.xlu1 %v1204_v62, %s1741_s11 }
 0x7e3   :  { %1216 = vrot.lane.b32.xlu1 %v1640_v58, %s1742_s12 }
 0x84d   :  { %v1196_v63 = vpop.permute.xlu1 %1195 }
 0x84e   :  { %1199 = vst.msk [vmem:[%s1839_s4] sm:$0xff] %vm1198_vm3, %v1196_v63 }
 0x851   :  { %v1207_v1 = vpop.permute.xlu1 %1206 }
 0x852   :  { %1210 = vst.msk [vmem:[%s1839_s4] sm:$0xff] %vm1209_vm4, %v1207_v1 }
 0x853   :  { %1215 = vst.msk [vmem:[%s1839_s4] sm:$0xff] %vm1214_vm5, %v1212_v2 }
 0x855   :  { %v1217_v3 = vpop.permute.xlu1 %1216 }
 0x856   :  { %1220 = vst.msk [vmem:[%s1839_s4] sm:$0xff] %vm1219_vm6, %v1217_v3 }
 0x857   :  { %1225 = vsyncpa [#allocation3], 1 }
 0x858   :  { %1226 = vsyncpa [#allocation5], 1 }
 0x859   :  { %1227 = vsyncpa [#allocation8], 1 }

</bundles_post_ra>
